<compile_context>
chip_gen: v6e
topology: v6e:2x2x1
jax: 0.10.0
libtpu: 0.0.40
codegen_flags: <defaults>
</compile_context>

<pallas_src>
import functools

import jax
import jax.numpy as jnp
from jax.experimental import pallas as pl
from jax.experimental.pallas import tpu as pltpu

LANE = 128          # vreg lane width -> feature dims padded to multiples of this
SUBLANE_BF16 = 16   # bf16 sublane packing -> minimum batch-row granularity
TM_MAX = 256        # max batch tile (amortizes per-grid-step overhead on v6e/v7x)


def _round_up(n, m):
    return (n + m - 1) // m * m


def _mlp_kernel(x_ref, *refs, num_layers):
    """Fused MLP on one (tm, in_p) batch tile.

    refs = (w1, b1, w2, b2, ..., wL, bL, out_ref).  All layers are chained in
    VMEM; only the final activations are written.  MXU matmuls in bf16 with f32
    accumulation; bias add / ReLU epilogues in f32 on the VPU.
    """
    out_ref = refs[-1]
    h = x_ref[...]                                    # (tm, in_p)  bf16
    y = None
    for l in range(num_layers):
        w = refs[2 * l][...]                          # (in_p, out_p) bf16
        b = refs[2 * l + 1][...]                      # (1, out_p)    f32
        y = jnp.dot(h, w, preferred_element_type=jnp.float32) + b
        if l < num_layers - 1:
            h = jnp.maximum(y, 0.0).astype(jnp.bfloat16)
    out_ref[...] = y.astype(out_ref.dtype)


def prepare_params(params, *, lane=LANE):
    """One-time padding + bf16 cast of (w_t (in,out) f32, b (out,) f32) params.

    Zero-padding is semantics-preserving: padded weight rows/cols and padded
    bias entries are 0, so padded activation columns stay 0 through ReLU and
    contribute nothing downstream.  Call once and reuse; keeps per-forward HBM
    traffic limited to activations.
    """
    padded = []
    for w_t, b in params:
        fi, fo = w_t.shape
        fip, fop = _round_up(fi, lane), _round_up(fo, lane)
        w_pad = jnp.pad(w_t.astype(jnp.bfloat16), ((0, fip - fi), (0, fop - fo)))
        b_pad = jnp.pad(b.astype(jnp.float32), (0, fop - fo)).reshape(1, fop)
        padded.append((w_pad, b_pad))
    return padded


def mlp_forward(x, padded_params, out_features, *, tm=None):
    """x: (B, in_features) f32; padded_params from prepare_params()."""
    batch, in_f = x.shape
    num_layers = len(padded_params)
    in_p = padded_params[0][0].shape[0]
    out_p = padded_params[-1][0].shape[1]

    # Adaptive batch tile: only pad to the bf16 sublane multiple for small
    # batches; fatter tiles (up to TM_MAX) for large batches.
    if tm is None:
        tm = min(TM_MAX, _round_up(max(batch, 1), SUBLANE_BF16))
    batch_p = _round_up(batch, tm)

    x_pad = jnp.pad(x.astype(jnp.bfloat16),
                    ((0, batch_p - batch), (0, in_p - in_f)))

    flat_inputs = [x_pad]
    in_specs = [pl.BlockSpec((tm, in_p), lambda i: (i, 0))]

    flops = 0
    # Weights/biases are DMA'd into VMEM once per call (constant index_map and
    # single buffering), so count their bytes once; x and the bf16 output are
    # streamed per batch tile.
    bytes_accessed = x_pad.size * 2
    resident_vmem = 0
    max_fop = 0
    for w_pad, b_pad in padded_params:
        fip, fop = w_pad.shape
        max_fop = max(max_fop, fop)
        flat_inputs += [w_pad, b_pad]
        in_specs += [
            # Constant index_map + single-buffering: whole weight stack stays
            # VMEM-resident across batch tiles with no wasted double buffer.
            pl.BlockSpec((fip, fop), lambda i: (0, 0),
                         pipeline_mode=pl.Buffered(1)),
            pl.BlockSpec((1, fop), lambda i: (0, 0),
                         pipeline_mode=pl.Buffered(1)),
        ]
        flops += 2 * batch_p * fip * fop
        w_bytes = w_pad.size * 2
        b_bytes = b_pad.size * 4
        bytes_accessed += w_bytes + b_bytes
        resident_vmem += w_bytes + b_bytes
    bytes_accessed += batch_p * out_p * 2   # bf16 output writeback

    # VMEM budget: single-buffered weights/biases + double-buffered input and
    # output tiles + f32 intermediates + headroom for compiler temporaries.
    vmem_need = (resident_vmem
                 + 2 * tm * in_p * 2          # input tile, double-buffered
                 + 2 * tm * out_p * 2         # output tile, double-buffered
                 + 2 * tm * max_fop * 4)      # f32 intermediate activations
    vmem_limit = int(min(max(2 * vmem_need + (4 << 20), 32 << 20), 64 << 20))

    kernel = functools.partial(_mlp_kernel, num_layers=num_layers)
    y_pad = pl.pallas_call(
        kernel,
        grid=(batch_p // tm,),
        out_shape=jax.ShapeDtypeStruct((batch_p, out_p), jnp.bfloat16),
        in_specs=in_specs,
        out_specs=pl.BlockSpec((tm, out_p), lambda i: (i, 0)),
        compiler_params=pltpu.CompilerParams(
            dimension_semantics=("parallel",),
            vmem_limit_bytes=vmem_limit),
        cost_estimate=pl.CostEstimate(
            flops=flops, transcendentals=0, bytes_accessed=bytes_accessed),
    )(*flat_inputs)
    return y_pad[:batch, :out_features]


def init_mlp_params(key, input_size, hidden_sizes, output_size):
    """Deterministic init mirroring nn.Linear's U(-1/sqrt(fan_in), 1/sqrt(fan_in))."""
    layer_sizes = [input_size] + list(hidden_sizes) + [output_size]
    params = []
    for i in range(len(layer_sizes) - 1):
        fan_in, fan_out = layer_sizes[i], layer_sizes[i + 1]
        key, kw, kb = jax.random.split(key, 3)
        bound = 1.0 / jnp.sqrt(fan_in)
        # Stored already transposed: (in_features, out_features).
        w_t = jax.random.uniform(kw, (fan_in, fan_out), jnp.float32, -bound, bound)
        b = jax.random.uniform(kb, (fan_out,), jnp.float32, -bound, bound)
        params.append((w_t, b))
    return params


def mlp_reference(x, params):
    """Plain-JAX reference using the same bf16-matmul / f32-accumulate recipe."""
    n = len(params)
    h = x
    for i, (w_t, b) in enumerate(params):
        h = jnp.dot(h.astype(jnp.bfloat16), w_t.astype(jnp.bfloat16),
                    preferred_element_type=jnp.float32) + b
        if i < n - 1:
            h = jnp.maximum(h, 0.0)
    return h


if __name__ == "__main__":
    # Small, MLP-shaped example: batch=8, input=32, hidden=[64, 64], output=16.
    input_size, hidden_sizes, output_size = 32, [64, 64], 16
    batch = 8

    key = jax.random.PRNGKey(0)
    key, kx = jax.random.split(key)
    x = jax.random.normal(kx, (batch, input_size), dtype=jnp.float32)
    params = init_mlp_params(key, input_size, hidden_sizes, output_size)

    # Pad/cast once, outside the forward path (cached across calls).
    padded_params = prepare_params(params)

    fwd = jax.jit(mlp_forward, static_argnums=2)
    out = jax.block_until_ready(fwd(x, padded_params, output_size))

    ref = mlp_reference(x, params)
    assert out.shape == (batch, output_size)
    assert jnp.allclose(out.astype(jnp.float32), ref, atol=2e-2, rtol=2e-2), \
        "mismatch vs reference"

    print("KERNEL_OK")
</pallas_src>

<mosaic_0001>
module attributes {stable_mosaic.version = 11 : i64} {
  func.func @_mlp_kernel(%arg0: i32, %arg1: memref<16x128xbf16, #tpu.memory_space<vmem>>, %arg2: memref<128x128xbf16, #tpu.memory_space<vmem>>, %arg3: memref<1x128xf32, #tpu.memory_space<vmem>>, %arg4: memref<128x128xbf16, #tpu.memory_space<vmem>>, %arg5: memref<1x128xf32, #tpu.memory_space<vmem>>, %arg6: memref<128x128xbf16, #tpu.memory_space<vmem>>, %arg7: memref<1x128xf32, #tpu.memory_space<vmem>>, %arg8: memref<16x128xbf16, #tpu.memory_space<vmem>>) attributes {dimension_semantics = [#tpu.dimension_semantics<parallel>], iteration_bounds = array<i64: 1>, scalar_prefetch = 0 : i64, scratch_operands = 0 : i64, tpu.core_type = #tpu.core_type<tc>, window_params = [{transform_indices = @transform_0, window_bounds = array<i64: 16, 128>}, {pipeline_mode = #tpu.pipeline_mode<synchronous>, transform_indices = @transform_1, window_bounds = array<i64: 128, 128>}, {pipeline_mode = #tpu.pipeline_mode<synchronous>, transform_indices = @transform_2, window_bounds = array<i64: 1, 128>}, {pipeline_mode = #tpu.pipeline_mode<synchronous>, transform_indices = @transform_3, window_bounds = array<i64: 128, 128>}, {pipeline_mode = #tpu.pipeline_mode<synchronous>, transform_indices = @transform_4, window_bounds = array<i64: 1, 128>}, {pipeline_mode = #tpu.pipeline_mode<synchronous>, transform_indices = @transform_5, window_bounds = array<i64: 128, 128>}, {pipeline_mode = #tpu.pipeline_mode<synchronous>, transform_indices = @transform_6, window_bounds = array<i64: 1, 128>}, {transform_indices = @transform_7, window_bounds = array<i64: 16, 128>}]} {
    %c0 = arith.constant 0 : index
    %c0_0 = arith.constant 0 : index
    %0 = vector.load %arg1[%c0, %c0_0] : memref<16x128xbf16, #tpu.memory_space<vmem>>, vector<16x128xbf16>
    %c0_1 = arith.constant 0 : index
    %c0_2 = arith.constant 0 : index
    %1 = vector.load %arg2[%c0_1, %c0_2] : memref<128x128xbf16, #tpu.memory_space<vmem>>, vector<128x128xbf16>
    %c0_3 = arith.constant 0 : index
    %c0_4 = arith.constant 0 : index
    %2 = vector.load %arg3[%c0_3, %c0_4] : memref<1x128xf32, #tpu.memory_space<vmem>>, vector<1x128xf32>
    %cst = arith.constant dense<0.000000e+00> : vector<16x128xf32>
    %3 = tpu.matmul %0, %1, %cst {dimension_numbers = #tpu.dot_dimension_numbers<[1], [0], [0], [1], [0, 0, 1, 1], [], []>} : vector<16x128xbf16>, vector<128x128xbf16>, vector<16x128xf32> -> vector<16x128xf32>
    %4 = vector.broadcast %2 : vector<1x128xf32> to vector<16x128xf32>
    %5 = arith.addf %3, %4 : vector<16x128xf32>
    %cst_5 = arith.constant 0.000000e+00 : f32
    %6 = vector.broadcast %cst_5 : f32 to vector<16x128xf32>
    %7 = arith.maximumf %5, %6 : vector<16x128xf32>
    %8 = arith.truncf %7 : vector<16x128xf32> to vector<16x128xbf16>
    %c0_6 = arith.constant 0 : index
    %c0_7 = arith.constant 0 : index
    %9 = vector.load %arg4[%c0_6, %c0_7] : memref<128x128xbf16, #tpu.memory_space<vmem>>, vector<128x128xbf16>
    %c0_8 = arith.constant 0 : index
    %c0_9 = arith.constant 0 : index
    %10 = vector.load %arg5[%c0_8, %c0_9] : memref<1x128xf32, #tpu.memory_space<vmem>>, vector<1x128xf32>
    %cst_10 = arith.constant dense<0.000000e+00> : vector<16x128xf32>
    %11 = tpu.matmul %8, %9, %cst_10 {dimension_numbers = #tpu.dot_dimension_numbers<[1], [0], [0], [1], [0, 0, 1, 1], [], []>} : vector<16x128xbf16>, vector<128x128xbf16>, vector<16x128xf32> -> vector<16x128xf32>
    %12 = vector.broadcast %10 : vector<1x128xf32> to vector<16x128xf32>
    %13 = arith.addf %11, %12 : vector<16x128xf32>
    %cst_11 = arith.constant 0.000000e+00 : f32
    %14 = vector.broadcast %cst_11 : f32 to vector<16x128xf32>
    %15 = arith.maximumf %13, %14 : vector<16x128xf32>
    %16 = arith.truncf %15 : vector<16x128xf32> to vector<16x128xbf16>
    %c0_12 = arith.constant 0 : index
    %c0_13 = arith.constant 0 : index
    %17 = vector.load %arg6[%c0_12, %c0_13] : memref<128x128xbf16, #tpu.memory_space<vmem>>, vector<128x128xbf16>
    %c0_14 = arith.constant 0 : index
    %c0_15 = arith.constant 0 : index
    %18 = vector.load %arg7[%c0_14, %c0_15] : memref<1x128xf32, #tpu.memory_space<vmem>>, vector<1x128xf32>
    %cst_16 = arith.constant dense<0.000000e+00> : vector<16x128xf32>
    %19 = tpu.matmul %16, %17, %cst_16 {dimension_numbers = #tpu.dot_dimension_numbers<[1], [0], [0], [1], [0, 0, 1, 1], [], []>} : vector<16x128xbf16>, vector<128x128xbf16>, vector<16x128xf32> -> vector<16x128xf32>
    %20 = vector.broadcast %18 : vector<1x128xf32> to vector<16x128xf32>
    %21 = arith.addf %19, %20 : vector<16x128xf32>
    %22 = arith.truncf %21 : vector<16x128xf32> to vector<16x128xbf16>
    %c0_17 = arith.constant 0 : index
    %c0_18 = arith.constant 0 : index
    %23 = vector.load %arg8[%c0_17, %c0_18] : memref<16x128xbf16, #tpu.memory_space<vmem>>, vector<16x128xbf16>
    tpu.vector_store %arg8[%c0_17, %c0_18], %22 {strides = array<i32>} : memref<16x128xbf16, #tpu.memory_space<vmem>>, vector<16x128xbf16>,
    return
  }
  func.func @transform_0(%arg0: i32) -> (i32, i32) {
    %c0_i32 = arith.constant 0 : i32
    %c0_i32_0 = arith.constant 0 : i32
    return %arg0, %c0_i32 : i32, i32
  }
  func.func @transform_1(%arg0: i32) -> (i32, i32) {
    %c0_i32 = arith.constant 0 : i32
    %c0_i32_0 = arith.constant 0 : i32
    %c0_i32_1 = arith.constant 0 : i32
    return %c0_i32, %c0_i32_0 : i32, i32
  }
  func.func @transform_2(%arg0: i32) -> (i32, i32) {
    %c0_i32 = arith.constant 0 : i32
    %c0_i32_0 = arith.constant 0 : i32
    %c0_i32_1 = arith.constant 0 : i32
    return %c0_i32, %c0_i32_0 : i32, i32
  }
  func.func @transform_3(%arg0: i32) -> (i32, i32) {
    %c0_i32 = arith.constant 0 : i32
    %c0_i32_0 = arith.constant 0 : i32
    %c0_i32_1 = arith.constant 0 : i32
    return %c0_i32, %c0_i32_0 : i32, i32
  }
  func.func @transform_4(%arg0: i32) -> (i32, i32) {
    %c0_i32 = arith.constant 0 : i32
    %c0_i32_0 = arith.constant 0 : i32
    %c0_i32_1 = arith.constant 0 : i32
    return %c0_i32, %c0_i32_0 : i32, i32
  }
  func.func @transform_5(%arg0: i32) -> (i32, i32) {
    %c0_i32 = arith.constant 0 : i32
    %c0_i32_0 = arith.constant 0 : i32
    %c0_i32_1 = arith.constant 0 : i32
    return %c0_i32, %c0_i32_0 : i32, i32
  }
  func.func @transform_6(%arg0: i32) -> (i32, i32) {
    %c0_i32 = arith.constant 0 : i32
    %c0_i32_0 = arith.constant 0 : i32
    %c0_i32_1 = arith.constant 0 : i32
    return %c0_i32, %c0_i32_0 : i32, i32
  }
  func.func @transform_7(%arg0: i32) -> (i32, i32) {
    %c0_i32 = arith.constant 0 : i32
    %c0_i32_0 = arith.constant 0 : i32
    return %arg0, %c0_i32 : i32, i32
  }
}

</mosaic_0001>

<bundles_post_ra>
// kernel: mlp_forward.1
= control target key start
LH: loop header
LB: loop body
LE: loop exit
PB: predicated region body
PF: predicated region fallthrough
CT: control target
= control target key end

     0   :  { %12 = vsyncpa [#allocation3], 0  ;;  %s755_s0 = inlined_call_operand.vmem [shape: bf16[16,128], index: 0, kind: input, shape index: {}]   ;;  %s756_s1 = inlined_call_operand.hbm [shape: bf16[128,128], index: 1, kind: input, shape index: {}]   ;;  %s757_s2 = inlined_call_operand.vmem [shape: f32[1,128], index: 2, kind: input, shape index: {}]   ;;  %s758_s3 = inlined_call_operand.hbm [shape: bf16[128,128], index: 3, kind: input, shape index: {}]   ;;  %s759_s4 = inlined_call_operand.vmem [shape: f32[1,128], index: 4, kind: input, shape index: {}]   ;;  %s760_s5 = inlined_call_operand.hbm [shape: bf16[128,128], index: 5, kind: input, shape index: {}]   ;;  %s761_s6 = inlined_call_operand.vmem [shape: f32[1,128], index: 6, kind: input, shape index: {}]   ;;  %s762_s7 = inlined_call_operand.vmem [shape: bf16[16,128], index: 7, kind: output, shape index: {}]  }
   0x1   :  { %13 = vsyncpa [#allocation5], 0  ;;  %s654_s24 = smov [#allocation4]   ;;  %s655_s26 = smov [#allocation2]  }
   0x2   :  { %s35_s25 = sshll.u32 %s654_s24, 4  ;;  %s21_s27 = sshll.u32 %s655_s26, 4  ;;  %s36_s25 = int_to_ptr.vmem [resolvable:$true] %s35_s25  ;;  %s22_s27 = int_to_ptr.vmem [resolvable:$true] %s21_s27 }
   0x3   :  { %s598_s28 = scalar_lea.vmem %s36_s25, 1024  ;;  %p603_p1 = scmp.lt.s32.totalorder %s36_s25, %s36_s25 }
   0x4   :  { %p599_p0 = scmp.ne.s32.totalorder %s36_s25, %s598_s28  ;;  %p604_p2 = scmp.lt.s32.totalorder %s598_s28, %s598_s28 }
   0x6   :  { %p605_p3 = por %p604_p2, %p603_p1 }
   0x8   :  { %p606_p4 = pnand %p605_p3, %p599_p0 }
   0xa   :  { %609 = shalt.err (!%p606_p4)
}
   0xb   :  { %s656_s29 = smov 64   ;;  %s657_s30 = smov 4  }
   0xc   :  { %41 = dma.hbm_to_vmem [thread:$0]  %s758_s3, 1024, %s36_s25, [#allocation5], %s656_s29, %s656_s29, %s657_s30  }
   0xd   :  { %s618_s10 = scalar_lea.vmem %s22_s27, 1024  ;;  %p623_p6 = scmp.lt.s32.totalorder %s22_s27, %s22_s27 }
   0xe   :  { %p619_p5 = scmp.ne.s32.totalorder %s22_s27, %s618_s10  ;;  %p624_p7 = scmp.lt.s32.totalorder %s618_s10, %s618_s10 }
  0x10   :  { %p625_p8 = por %p624_p7, %p623_p6 }
  0x12   :  { %p626_p9 = pnand %p625_p8, %p619_p5 }
  0x14   :  { %629 = shalt.err (!%p626_p9)
}
  0x15   :  { %27 = dma.hbm_to_vmem [thread:$0]  %s756_s1, 1024, %s22_s27, [#allocation3], %s656_s29, %s656_s29, %s657_s30  }
  0x16   :  { %s658_s13 = smov [#allocation6]  }
  0x17   :  { %s49_s14 = sshll.u32 %s658_s13, 4  ;;  %s50_s14 = int_to_ptr.vmem [resolvable:$true] %s49_s14 }
  0x18   :  { %s638_s15 = scalar_lea.vmem %s50_s14, 1024  ;;  %p643_p11 = scmp.lt.s32.totalorder %s50_s14, %s50_s14 }
  0x19   :  { %p639_p10 = scmp.ne.s32.totalorder %s50_s14, %s638_s15  ;;  %p644_p12 = scmp.lt.s32.totalorder %s638_s15, %s638_s15 }
  0x1b   :  { %p645_p13 = por %p644_p12, %p643_p11 }
  0x1d   :  { %p646_p0 = pnand %p645_p13, %p639_p10 }
  0x1f   :  { %649 = shalt.err (!%p646_p0)
}
  0x20   :  { %55 = dma.hbm_to_vmem [thread:$0]  %s760_s5, 1024, %s50_s14, [#allocation5], %s656_s29, %s656_s29, %s657_s30  }
  0x21   :  { %650 = dma.done.wait [#allocation3], 1024  }
  0x22   :  { %651 = vsyncadd [#allocation3], 4294966272 }
  0x23   :  { %652 = dma.done.wait [#allocation5], 2048  }
  0x24   :  { %653 = vsyncadd [#allocation5], 4294965248  ;;  %v659_v0 = vmov 0.0   ;;  %vm660_vm0 = vmmov 0   ;;  %v565_v1 = vld [vmem:[#allocation2 + $0x38] sm:$0xff]   ;;  %v566_v2 = vld [vmem:[#allocation2 + $0x30] sm:$0xff]  }
  0x25   :  { %498 = vmatprep.subr.bf16.mxu0 %v659_v0  ;;  %514 = vmatprep.mubr.msk.bf16.mxu0 %vm660_vm0, %v659_v0  ;;  %v567_v3 = vld [vmem:[#allocation2 + $0x28] sm:$0xff]   ;;  %v574_v4 = vld [vmem:[#allocation4 + $0x38] sm:$0xff]   ;;  %v568_v5 = vld [vmem:[#allocation2 + $0x20] sm:$0xff]  }
  0x26   :  { %518 = vmatprep.subr.bf16.mxu1 %v659_v0  ;;  %534 = vmatprep.mubr.msk.bf16.mxu1 %vm660_vm0, %v659_v0  ;;  %v575_v6 = vld [vmem:[#allocation4 + $0x30] sm:$0xff]   ;;  %v569_v7 = vld [vmem:[#allocation2 + $0x18] sm:$0xff]   ;;  %v576_v8 = vld [vmem:[#allocation4 + $0x28] sm:$0xff]  }
  0x27   :  { %499 = vmatpush3.bf16.msra.mxu0 %v565_v1  ;;  %519 = vmatpush3.bf16.msra.mxu1 %v574_v4  ;;  %v570_v9 = vld [vmem:[#allocation2 + $0x10] sm:$0xff]   ;;  %v577_v10 = vld [vmem:[#allocation4 + $0x20] sm:$0xff]   ;;  %v571_v11 = vld [vmem:[#allocation2 + $0x8] sm:$0xff]  }
  0x28   :  { %500 = vmatprep.subr.bf16.mxu0 %v659_v0  ;;  %520 = vmatprep.subr.bf16.mxu1 %v659_v0  ;;  %v578_v12 = vld [vmem:[#allocation4 + $0x18] sm:$0xff]   ;;  %v572_v13 = vld [vmem:[#allocation2] sm:$0xff]   ;;  %v579_v15 = vld [vmem:[#allocation4 + $0x10] sm:$0xff]  }
  0x29   :  { %v573_v14 = vld [vmem:[%s755_s0] sm:$0xff]   ;;  %v580_v16 = vld [vmem:[#allocation4 + $0x8] sm:$0xff]   ;;  %v582_v18 = vld [vmem:[#allocation6 + $0x38] sm:$0xff]  }
  0x2a   :  { %v581_v17 = vld [vmem:[#allocation4] sm:$0xff]   ;;  %v583_v19 = vld [vmem:[#allocation6 + $0x30] sm:$0xff]   ;;  %v584_v20 = vld [vmem:[#allocation6 + $0x28] sm:$0xff]  }
  0x2b   :  { %501 = vmatpush3.bf16.msra.mxu0 %v566_v2  ;;  %521 = vmatpush3.bf16.msra.mxu1 %v575_v6  ;;  %v585_v21 = vld [vmem:[#allocation6 + $0x20] sm:$0xff]   ;;  %v586_v22 = vld [vmem:[#allocation6 + $0x18] sm:$0xff]   ;;  %v587_v33 = vld [vmem:[#allocation6 + $0x10] sm:$0xff]  }
  0x2c   :  { %502 = vmatprep.subr.bf16.mxu0 %v659_v0  ;;  %522 = vmatprep.subr.bf16.mxu1 %v659_v0  ;;  %v434_v23 = vld [vmem:[%s757_s2] ss:$0 sm:$0xff]  ;;  %v588_v34 = vld [vmem:[#allocation6 + $0x8] sm:$0xff]  }
  0x2d   :  { %v589_v35 = vld [vmem:[#allocation6] sm:$0xff]  }
  0x2e   :  { %v444_v36 = vld [vmem:[%s759_s4] ss:$0 sm:$0xff] }
  0x2f   :  { %503 = vmatpush3.bf16.msra.mxu0 %v567_v3  ;;  %523 = vmatpush3.bf16.msra.mxu1 %v576_v8  ;;  %v453_v47 = vld [vmem:[%s761_s6] ss:$0 sm:$0xff] }
  0x30   :  { %504 = vmatprep.subr.bf16.mxu0 %v659_v0  ;;  %524 = vmatprep.subr.bf16.mxu1 %v659_v0 }
  0x33   :  { %505 = vmatpush3.bf16.msra.mxu0 %v568_v5  ;;  %525 = vmatpush3.bf16.msra.mxu1 %v577_v10 }
  0x34   :  { %506 = vmatprep.subr.bf16.mxu0 %v659_v0  ;;  %526 = vmatprep.subr.bf16.mxu1 %v659_v0 }
  0x37   :  { %507 = vmatpush3.bf16.msra.mxu0 %v569_v7  ;;  %527 = vmatpush3.bf16.msra.mxu1 %v578_v12 }
  0x38   :  { %508 = vmatprep.subr.bf16.mxu0 %v659_v0  ;;  %528 = vmatprep.subr.bf16.mxu1 %v659_v0 }
  0x3b   :  { %509 = vmatpush3.bf16.msra.mxu0 %v570_v9  ;;  %529 = vmatpush3.bf16.msra.mxu1 %v579_v15 }
  0x3c   :  { %510 = vmatprep.subr.bf16.mxu0 %v659_v0  ;;  %530 = vmatprep.subr.bf16.mxu1 %v659_v0 }
  0x3f   :  { %511 = vmatpush3.bf16.msra.mxu0 %v571_v11  ;;  %531 = vmatpush3.bf16.msra.mxu1 %v580_v16 }
  0x40   :  { %512 = vmatprep.subr.bf16.mxu0 %v659_v0  ;;  %532 = vmatprep.subr.bf16.mxu1 %v659_v0 }
  0x43   :  { %513 = vmatpush3.bf16.msra.mxu0 %v572_v13  ;;  %533 = vmatpush3.bf16.msra.mxu1 %v581_v17 }
  0x44   :  { %538 = vmatprep.subr.bf16.mxu0 %v659_v0 }
  0x46   :  { %515 = vmatmul.mubr.bf16.vlgmr.msra.gmra.mxu0 %v573_v14 }
  0x47   :  { %554 = vmatprep.mubr.msk.bf16.mxu0 %vm660_vm0, %v659_v0  ;;  %539 = vmatpush3.bf16.msra.mxu0 %v582_v18 }
  0x48   :  { %540 = vmatprep.subr.bf16.mxu0 %v659_v0 }
  0x4b   :  { %541 = vmatpush3.bf16.msra.mxu0 %v583_v19 }
  0x4c   :  { %542 = vmatprep.subr.bf16.mxu0 %v659_v0 }
  0x4f   :  { %543 = vmatpush3.bf16.msra.mxu0 %v584_v20 }
  0x50   :  { %544 = vmatprep.subr.bf16.mxu0 %v659_v0 }
  0x53   :  { %545 = vmatpush3.bf16.msra.mxu0 %v585_v21 }
  0x54   :  { %546 = vmatprep.subr.bf16.mxu0 %v659_v0 }
  0x57   :  { %547 = vmatpush3.bf16.msra.mxu0 %v586_v22 }
  0x58   :  { %548 = vmatprep.subr.bf16.mxu0 %v659_v0 }
  0x5b   :  { %549 = vmatpush3.bf16.msra.mxu0 %v587_v33 }
  0x5c   :  { %550 = vmatprep.subr.bf16.mxu0 %v659_v0 }
  0x5f   :  { %551 = vmatpush3.bf16.msra.mxu0 %v588_v34 }
  0x60   :  { %552 = vmatprep.subr.bf16.mxu0 %v659_v0 }
  0x63   :  { %553 = vmatpush3.bf16.msra.mxu0 %v589_v35 }
 0x106   :  { %v181_v24 = vpop.f32.mrf.mxu0 }
 0x107   :  { %v182_v26 = vadd.f32 %v434_v23, %v181_v24 }
 0x108   :  { %v516_v25 = vpop.f32.mrf.mxu0 }
 0x109   :  { %v188_v30 = vmax.f32 %v182_v26, 0.0 }
 0x10a   :  { %v184_v27 = vpop.f32.mrf.mxu0 }
 0x10b   :  { %v185_v28 = vadd.f32 %v434_v23, %v184_v27 }
 0x10c   :  { %v517_v29 = vpop.f32.mrf.mxu0 }
 0x10d   :  { %v189_v31 = vmax.f32 %v185_v28, 0.0 }
 0x10f   :  { %v190_v32 = vpack.c.bf16 %v189_v31, %v188_v30 }
 0x111   :  { %535 = vmatmul.mubr.bf16.vlgmr.msra.gmra.mxu1 %v190_v32 }
 0x1d1   :  { %v296_v37 = vpop.f32.mrf.mxu1 }
 0x1d2   :  { %v297_v39 = vadd.f32 %v444_v36, %v296_v37 }
 0x1d3   :  { %v536_v38 = vpop.f32.mrf.mxu1 }
 0x1d4   :  { %v303_v43 = vmax.f32 %v297_v39, 0.0 }
 0x1d5   :  { %v299_v40 = vpop.f32.mrf.mxu1 }
 0x1d6   :  { %v300_v41 = vadd.f32 %v444_v36, %v299_v40 }
 0x1d7   :  { %v537_v42 = vpop.f32.mrf.mxu1 }
 0x1d8   :  { %v304_v44 = vmax.f32 %v300_v41, 0.0 }
 0x1da   :  { %v305_v45 = vpack.c.bf16 %v304_v44, %v303_v43 }
 0x1dc   :  { %555 = vmatmul.mubr.bf16.vlgmr.msra.gmra.mxu0 %v305_v45 }
 0x29c   :  { %v411_v46 = vpop.f32.mrf.mxu0 }
 0x29d   :  { %v412_v50 = vadd.f32 %v453_v47, %v411_v46 }
 0x29e   :  { %v556_v48 = vpop.f32.mrf.mxu0 }
 0x2a0   :  { %v414_v49 = vpop.f32.mrf.mxu0 }
 0x2a1   :  { %v415_v51 = vadd.f32 %v453_v47, %v414_v49 }
 0x2a2   :  { %v557_v52 = vpop.f32.mrf.mxu0 }
 0x2a3   :  { %v469_v53 = vpack.c.bf16 %v415_v51, %v412_v50 }
 0x2a5   :  { %470 = vst [vmem:[%s762_s7] sm:$0xff] %v469_v53  }
 0x2a6   :  { %432 = vsyncpa [#allocation3], 1 }
 0x2a7   :  { %433 = vsyncpa [#allocation5], 1 }

</bundles_post_ra>
